<compile_context>
chip_gen: v6e
topology: v6e:2x2x1
jax: 0.10.0
libtpu: 0.0.40
codegen_flags: <defaults>
</compile_context>

<pallas_src>
import jax
import jax.numpy as jnp
from jax.experimental import pallas as pl
from jax.experimental.pallas import tpu as pltpu


def _round_up(x, m):
    return (x + m - 1) // m * m


def _encoder_kernel(x_ref, w_ref, b_ref, o_ref):
    # x_ref: (TM, D), w_ref: (D, TN), b_ref: (1, TN) f32, o_ref: (TM, TN)
    y = jnp.dot(x_ref[...], w_ref[...], preferred_element_type=jnp.float32)  # MXU, f32 acc
    y = y + b_ref[...]                                   # bias broadcast over rows (f32)
    o_ref[...] = jnp.maximum(y, 0.0).astype(o_ref.dtype)  # ReLU


def memo_controller_forward(x, w, b, *, use_bf16_matmul=False):
    """x: (B, S, D), w: (D, H), b: (H,) -> relu(x @ w + b) of shape (B, S, H)."""
    B, S, D = x.shape
    H = w.shape[1]
    M = B * S

    out_dtype = x.dtype
    compute_dtype = jnp.bfloat16 if use_bf16_matmul else x.dtype
    bc = jnp.dtype(compute_dtype).itemsize
    bo = jnp.dtype(out_dtype).itemsize

    # ---- generation-aware VMEM budget --------------------------------------
    try:
        vmem_cap = int(pltpu.get_tpu_info().vmem_capacity_bytes)
    except Exception:
        vmem_cap = 64 * 2**20          # v7x per-TC capacity: safe lower bound
    usable = int(min(vmem_cap, 128 * 2**20) * 0.7)       # headroom for compiler scratch

    # ---- H (lane / N axis) padding & tiling ---------------------------------
    # 256-granularity feeds the 2x256x256 MXU on v6e/v7x when on the bf16 path.
    gran = 256 if (use_bf16_matmul and H > 256) else 128
    H_pad = H if H <= 128 else _round_up(H, gran)         # small H: full-dim block is legal

    w_resident_budget = min(usable // 3, 12 * 2**20)
    if H_pad <= 128 or D * H_pad * bc <= w_resident_budget:
        TN, n_h = H_pad, 1                                 # W fully VMEM-resident
    else:
        TN = max(gran, (w_resident_budget // (2 * D * bc)) // gran * gran)
        TN = min(TN, H_pad)
        H_pad = _round_up(H_pad, TN)
        n_h = H_pad // TN

    # ---- M (row) tiling ------------------------------------------------------
    fixed = 2 * D * TN * bc + 2 * 8 * TN * 4               # W + bias, double-buffer worst case
    tile_budget = max(usable - fixed, 2 * 2**20)
    per_row = 2 * D * bc + 2 * TN * bo                     # double-buffered x + out rows
    TM = max(8, min(2048, tile_budget // per_row) // 8 * 8)
    TM = min(TM, _round_up(M, 8))
    if M % TM != 0:                                        # prefer a tile that divides M
        for cand in range(TM, max(8, TM // 2) - 1, -8):    # (avoids jnp.pad of x in HBM)
            if M % cand == 0:
                TM = cand
                break
    M_pad = _round_up(M, TM)
    if M_pad // TM == 1 and M > 8:                         # >= 2 row tiles for v7x megacore
        TM = max(8, _round_up((TM + 1) // 2, 8))
        M_pad = _round_up(M, TM)
    n_m = M_pad // TM

    # ---- operand prep: casts / pads happen once, HBM-side, outside the loop --
    x2 = x.reshape(M, D)
    if M_pad != M:
        x2 = jnp.pad(x2, ((0, M_pad - M), (0, 0)))         # D is never padded
    w_p = w if H_pad == H else jnp.pad(w, ((0, 0), (0, H_pad - H)))
    b_p = b if H_pad == H else jnp.pad(b, (0, H_pad - H))
    x2 = x2.astype(compute_dtype)
    w_p = w_p.astype(compute_dtype)
    b2 = b_p.astype(jnp.float32).reshape(1, H_pad)          # bias kept f32 (f32 accumulate)

    need = (2 * D * TN * bc + 2 * 8 * TN * 4
            + 2 * TM * D * bc + 2 * TM * TN * bo)
    vmem_limit = int(min(vmem_cap, max(2 * need, 32 * 2**20)))

    def build(single_buffer_invariants):
        inv = {}
        if single_buffer_invariants and n_h == 1:
            # W/bias block index is constant -> nothing to pipeline; single-buffer them.
            inv = dict(pipeline_mode=pl.Buffered(buffer_count=1))
        return pl.pallas_call(
            _encoder_kernel,
            out_shape=jax.ShapeDtypeStruct((M_pad, H_pad), out_dtype),
            grid_spec=pltpu.PrefetchScalarGridSpec(
                num_scalar_prefetch=0,
                grid=(n_h, n_m),                                      # h outer: W DMA'd once
                in_specs=[
                    pl.BlockSpec((TM, D), lambda h, m: (m, 0)),           # streamed x rows
                    pl.BlockSpec((D, TN), lambda h, m: (0, h), **inv),    # W
                    pl.BlockSpec((1, TN), lambda h, m: (0, h), **inv),    # bias
                ],
                out_specs=pl.BlockSpec((TM, TN), lambda h, m: (m, h)),
            ),
            compiler_params=pltpu.CompilerParams(
                dimension_semantics=("parallel", "parallel"),
                vmem_limit_bytes=vmem_limit,
            ),
        )

    try:
        out = jax.block_until_ready(build(True)(x2, w_p, b2))
    except Exception:
        # Fallback if this JAX build rejects Buffered(1) single-buffering.
        out = jax.block_until_ready(build(False)(x2, w_p, b2))

    return out[:M, :H].reshape(B, S, H)


if __name__ == "__main__":
    # Small shapes consistent with the module: batch=2, seq=8, input_dim=32, hidden=32
    B, S, D, H = 2, 8, 32, 32
    key = jax.random.PRNGKey(0)
    kx, kw, kb = jax.random.split(key, 3)

    x = jax.random.normal(kx, (B, S, D), dtype=jnp.float32)
    # Deterministic synthetic parameters (no checkpoint load)
    w = jax.random.normal(kw, (D, H), dtype=jnp.float32) * (1.0 / jnp.sqrt(D))
    b = jax.random.normal(kb, (H,), dtype=jnp.float32) * 0.01

    out = memo_controller_forward(x, w, b)
    out = jax.block_until_ready(out)

    # Correctness check against plain-JAX reference
    ref = jnp.maximum(x.reshape(B * S, D) @ w + b[None, :], 0.0).reshape(B, S, H)
    assert out.shape == ref.shape
    assert jnp.allclose(out, ref, atol=1e-5, rtol=1e-5)

    print("KERNEL_OK")
</pallas_src>

<mosaic_0001>
module attributes {stable_mosaic.version = 11 : i64} {
  func.func @_encoder_kernel(%arg0: i32, %arg1: i32, %arg2: memref<8x32xf32, #tpu.memory_space<vmem>>, %arg3: memref<32x32xf32, #tpu.memory_space<vmem>>, %arg4: memref<1x32xf32, #tpu.memory_space<vmem>>, %arg5: memref<8x32xf32, #tpu.memory_space<vmem>>) attributes {dimension_semantics = [#tpu.dimension_semantics<parallel>, #tpu.dimension_semantics<parallel>], iteration_bounds = array<i64: 1, 2>, scalar_prefetch = 0 : i64, scratch_operands = 0 : i64, tpu.core_type = #tpu.core_type<tc>, window_params = [{transform_indices = @transform_0, window_bounds = array<i64: 8, 32>}, {pipeline_mode = #tpu.pipeline_mode<synchronous>, transform_indices = @transform_1, window_bounds = array<i64: 32, 32>}, {pipeline_mode = #tpu.pipeline_mode<synchronous>, transform_indices = @transform_2, window_bounds = array<i64: 1, 32>}, {transform_indices = @transform_3, window_bounds = array<i64: 8, 32>}]} {
    %c0 = arith.constant 0 : index
    %c0_0 = arith.constant 0 : index
    %0 = vector.load %arg2[%c0, %c0_0] : memref<8x32xf32, #tpu.memory_space<vmem>>, vector<8x32xf32>
    %c0_1 = arith.constant 0 : index
    %c0_2 = arith.constant 0 : index
    %1 = vector.load %arg3[%c0_1, %c0_2] : memref<32x32xf32, #tpu.memory_space<vmem>>, vector<32x32xf32>
    %cst = arith.constant dense<0.000000e+00> : vector<8x32xf32>
    %2 = tpu.matmul %0, %1, %cst {dimension_numbers = #tpu.dot_dimension_numbers<[1], [0], [0], [1], [0, 0, 1, 1], [], []>} : vector<8x32xf32>, vector<32x32xf32>, vector<8x32xf32> -> vector<8x32xf32>
    %c0_3 = arith.constant 0 : index
    %c0_4 = arith.constant 0 : index
    %3 = vector.load %arg4[%c0_3, %c0_4] : memref<1x32xf32, #tpu.memory_space<vmem>>, vector<1x32xf32>
    %4 = vector.broadcast %3 : vector<1x32xf32> to vector<8x32xf32>
    %5 = arith.addf %2, %4 : vector<8x32xf32>
    %cst_5 = arith.constant 0.000000e+00 : f32
    %6 = vector.broadcast %cst_5 : f32 to vector<8x32xf32>
    %7 = arith.maximumf %5, %6 : vector<8x32xf32>
    %c0_6 = arith.constant 0 : index
    %c0_7 = arith.constant 0 : index
    %8 = vector.load %arg5[%c0_6, %c0_7] : memref<8x32xf32, #tpu.memory_space<vmem>>, vector<8x32xf32>
    tpu.vector_store %arg5[%c0_6, %c0_7], %7 {strides = array<i32>} : memref<8x32xf32, #tpu.memory_space<vmem>>, vector<8x32xf32>,
    return
  }
  func.func @transform_0(%arg0: i32, %arg1: i32) -> (i32, i32) {
    %c0_i32 = arith.constant 0 : i32
    %c0_i32_0 = arith.constant 0 : i32
    return %arg1, %c0_i32 : i32, i32
  }
  func.func @transform_1(%arg0: i32, %arg1: i32) -> (i32, i32) {
    %c0_i32 = arith.constant 0 : i32
    %c0_i32_0 = arith.constant 0 : i32
    return %c0_i32, %arg0 : i32, i32
  }
  func.func @transform_2(%arg0: i32, %arg1: i32) -> (i32, i32) {
    %c0_i32 = arith.constant 0 : i32
    %c0_i32_0 = arith.constant 0 : i32
    return %c0_i32, %arg0 : i32, i32
  }
  func.func @transform_3(%arg0: i32, %arg1: i32) -> (i32, i32) {
    %c0_i32 = arith.constant 0 : i32
    return %arg1, %arg0 : i32, i32
  }
}

module attributes {stable_mosaic.version = 11 : i64} {
  func.func @_encoder_kernel(%arg0: i32, %arg1: i32, %arg2: memref<8x32xf32, #tpu.memory_space<vmem>>, %arg3: memref<32x32xf32, #tpu.memory_space<vmem>>, %arg4: memref<1x32xf32, #tpu.memory_space<vmem>>, %arg5: memref<8x32xf32, #tpu.memory_space<vmem>>) attributes {dimension_semantics = [#tpu.dimension_semantics<parallel>, #tpu.dimension_semantics<parallel>], iteration_bounds = array<i64: 1, 2>, scalar_prefetch = 0 : i64, scratch_operands = 0 : i64, tpu.core_type = #tpu.core_type<tc>, window_params = [{transform_indices = @transform_0, window_bounds = array<i64: 8, 32>}, {transform_indices = @transform_1, window_bounds = array<i64: 32, 32>}, {transform_indices = @transform_2, window_bounds = array<i64: 1, 32>}, {transform_indices = @transform_3, window_bounds = array<i64: 8, 32>}]} {
    %c0 = arith.constant 0 : index
    %c0_0 = arith.constant 0 : index
    %0 = vector.load %arg2[%c0, %c0_0] : memref<8x32xf32, #tpu.memory_space<vmem>>, vector<8x32xf32>
    %c0_1 = arith.constant 0 : index
    %c0_2 = arith.constant 0 : index
    %1 = vector.load %arg3[%c0_1, %c0_2] : memref<32x32xf32, #tpu.memory_space<vmem>>, vector<32x32xf32>
    %cst = arith.constant dense<0.000000e+00> : vector<8x32xf32>
    %2 = tpu.matmul %0, %1, %cst {dimension_numbers = #tpu.dot_dimension_numbers<[1], [0], [0], [1], [0, 0, 1, 1], [], []>} : vector<8x32xf32>, vector<32x32xf32>, vector<8x32xf32> -> vector<8x32xf32>
    %c0_3 = arith.constant 0 : index
    %c0_4 = arith.constant 0 : index
    %3 = vector.load %arg4[%c0_3, %c0_4] : memref<1x32xf32, #tpu.memory_space<vmem>>, vector<1x32xf32>
    %4 = vector.broadcast %3 : vector<1x32xf32> to vector<8x32xf32>
    %5 = arith.addf %2, %4 : vector<8x32xf32>
    %cst_5 = arith.constant 0.000000e+00 : f32
    %6 = vector.broadcast %cst_5 : f32 to vector<8x32xf32>
    %7 = arith.maximumf %5, %6 : vector<8x32xf32>
    %c0_6 = arith.constant 0 : index
    %c0_7 = arith.constant 0 : index
    %8 = vector.load %arg5[%c0_6, %c0_7] : memref<8x32xf32, #tpu.memory_space<vmem>>, vector<8x32xf32>
    tpu.vector_store %arg5[%c0_6, %c0_7], %7 {strides = array<i32>} : memref<8x32xf32, #tpu.memory_space<vmem>>, vector<8x32xf32>,
    return
  }
  func.func @transform_0(%arg0: i32, %arg1: i32) -> (i32, i32) {
    %c0_i32 = arith.constant 0 : i32
    %c0_i32_0 = arith.constant 0 : i32
    return %arg1, %c0_i32 : i32, i32
  }
  func.func @transform_1(%arg0: i32, %arg1: i32) -> (i32, i32) {
    %c0_i32 = arith.constant 0 : i32
    %c0_i32_0 = arith.constant 0 : i32
    return %c0_i32, %arg0 : i32, i32
  }
  func.func @transform_2(%arg0: i32, %arg1: i32) -> (i32, i32) {
    %c0_i32 = arith.constant 0 : i32
    %c0_i32_0 = arith.constant 0 : i32
    return %c0_i32, %arg0 : i32, i32
  }
  func.func @transform_3(%arg0: i32, %arg1: i32) -> (i32, i32) {
    %c0_i32 = arith.constant 0 : i32
    return %arg1, %arg0 : i32, i32
  }
}

</mosaic_0001>

<bundles_post_ra>
// kernel: tpu_custom_call.1
= control target key start
LH: loop header
LB: loop body
LE: loop exit
PB: predicated region body
PF: predicated region fallthrough
CT: control target
= control target key end

     0   :  { %8 = vsyncpa [#allocation3], 0  ;;  %s890_s0 = inlined_call_operand.hbm [shape: f32[16,32], index: 0, kind: input, shape index: {}]   ;;  %s891_s1 = inlined_call_operand.hbm [shape: f32[32,32], index: 1, kind: input, shape index: {}]   ;;  %s892_s2 = inlined_call_operand.vmem [shape: f32[1,32], index: 2, kind: input, shape index: {}]   ;;  %s893_s3 = inlined_call_operand.hbm [shape: f32[16,32], index: 3, kind: output, shape index: {}]  }
   0x1   :  { %10 = vsyncpa [#allocation3 + $0x1], 0 }
   0x2   :  { %11 = vsyncpa [#allocation6], 0 }
   0x3   :  { %12 = vsyncpa [#allocation4], 0 }
   0x4   :  { %14 = vsyncpa [#allocation4 + $0x1], 0  ;;  %s720_s12 = smov 0   ;;  %s722_s13 = smov 0  }
   0x5   :  { %s724_s14 = smov 0   ;;  %s726_s15 = smov 0  }
   0x6   :  { %s728_s16 = smov 0   ;;  %s730_s17 = smov 0  }
   0x7 LB: > { %s442_s18 = sadd.s32 4294967295, %s691_s17   ;;  %s443_s19 = sadd.s32 4294967294, %s691_s17   ;;  %s691_s17 = sphi %s730_s17, %s20_s17   ;;  %s687_s16 = sphi %s728_s16, %s911_s16   ;;  %s683_s15 = sphi %s726_s15, %s910_s15   ;;  %s679_s14 = sphi %s724_s14, %s909_s14   ;;  %s675_s13 = sphi %s722_s13, %s908_s13   ;;  %s671_s12 = sphi %s720_s12, %s907_s12  }
   0x8   : > { %p52_p0 = scmp.ne.s32.totalorder %s675_s13, %s671_s12  ;;  %p754_p1 = scmp.eq.s32.totalorder %s442_s18, 0 }
   0x9   : > { %p758_p2 = scmp.eq.s32.totalorder %s442_s18, 1  ;;  %p136_p3 = scmp.eq.s32.totalorder %s443_s19, 1 }
   0xa   : > { %p764_p4 = por %p754_p1, %p52_p0  ;;  %p444_p5 = scmp.ge.s32.totalorder %s691_s17, 1 }
   0xb   : > { %p769_p6 = por %p136_p3, %p52_p0  ;;  %p143_p7 = scmp.lt.s32.totalorder %s691_s17, 3 }
   0xc   : > { %s897_s22 = scalar_select %p764_p4, 1, 0 }
   0xd   : > { %s898_s23 = scalar_select %p769_p6, 1, 0 }
   0xe   : > { %p774_p8 = pnand %p444_p5, %p143_p7  ;;  %s693_s25 = smov [#allocation5]  }
   0xf   : > { %s157_s26 = sshll.u32 %s693_s25, 4  ;;  %s29_s28 = sadd.s32 1, %s687_s16  ;;  %s158_s26 = int_to_ptr.vmem [resolvable:$true] %s157_s26 }
  0x10   : > { %p484_p9 = pneg %p774_p8  ;;  %s564_s29 = scalar_lea.vmem %s158_s26, 512 }
  0x11   : > { %p565_p13 = scmp.ne.s32.totalorder %s158_s26, %s564_s29  ;;  %p572_p5 = scmp.lt.s32.totalorder %s158_s26, %s158_s26 }
  0x12   : > { %p783_p11 = pnand %p484_p9, %p754_p1  ;;  %p573_p7 = scmp.lt.s32.totalorder %s564_s29, %s564_s29 }
  0x14   : > { %p555_p12 = pneg %p783_p11  ;;  %p574_p6 = por %p573_p7, %p572_p5 }
  0x16   : > { %p567_p0 = pnand %p565_p13, %p555_p12 }
  0x18   : > { %p568_p3 = pneg %p567_p0 }
  0x1a   : > { %p575_p4 = pnand %p574_p6, %p568_p3 }
  0x1c   : > { %578 = shalt.err (!%p575_p4)
}
  0x1d   : > { %s694_s30 = smov 128   ;;  %s695_s4 = smov 8  }
  0x1e   : > { %487 = dma.hbm_to_vmem [thread:$0]  (!%p783_p11), %s891_s1, 512, %s158_s26, [#allocation6], %s694_s30, %s694_s30, %s695_s4  }
  0x1f   : > { %p30_p6 = scmp.ge.s32.totalorder %s29_s28, 2  ;;  %s39_s7 = sadd.s32 1, %s679_s14 }
  0x20   : > { %p46_p4 = scmp.ne.s32.totalorder %s679_s14, %s675_s13  ;;  %p47_p9 = scmp.eq.s32.totalorder %s691_s17, 0 }
  0x21   : > { %s913_s28 = smov (%p30_p6, %s29_s28), 0  ;;  %p497_p0 = scmp.lt.s32.totalorder %s691_s17, 2 }
  0x22   : > { %p801_p12 = por %p47_p9, %p46_p4  ;;  %p807_p13 = por %p758_p2, %p46_p4 }
  0x23   : > { %s36_s10 = ssub.s32 %s687_s16, %s913_s28  ;;  %s177_s11 = sand.u32 1, %s679_s14  }
  0x24   : > { %p37_p11 = scmp.eq.s32.totalorder %s36_s10, 0  ;;  %s448_s18 = sshll.u32 %s177_s11, 3 }
  0x25   : > { %s449_s25 = sshll.u32 %s687_s16, 7  ;;  %s181_s30 = scalar_lea.vmem [#allocation2], %s448_s18 }
  0x26   : > { %s816_s19 = scalar_select %p37_p11, %s679_s14, %s39_s7  }
  0x27   : > { %s186_s29 = scalar_lea.hbm %s890_s0, %s449_s25  ;;  %s188_s4 = sshll.u32 %s181_s30, 4  ;;  %s189_s4 = int_to_ptr.vmem [resolvable:$true] %s188_s4 }
  0x28   : > { %p824_p2 = pnand %p497_p0, %p801_p12  ;;  %s178_s5 = scalar_lea.sflag [#allocation3], %s177_s11 }
  0x29   : > { %s592_s6 = scalar_lea.vmem %s189_s4, 128  ;;  %s696_s7 = smov [#allocation2]  }
  0x2a   : > { %p581_p3 = pneg %p824_p2  ;;  %p593_p5 = scmp.ne.s32.totalorder %s189_s4, %s592_s6 }
  0x2b   : > { %s597_s10 = sshll.u32 %s696_s7, 4  ;;  %s598_s10 = int_to_ptr.vmem [resolvable:$false] %s597_s10 }
  0x2c   : > { %p595_p7 = pnand %p593_p5, %p581_p3  ;;  %s599_s25 = scalar_lea.vmem %s598_s10, 256 }
  0x2d   : > { %p600_p4 = scmp.lt.s32.totalorder %s189_s4, %s598_s10  ;;  %p601_p9 = scmp.lt.s32.totalorder %s599_s25, %s592_s6 }
  0x2e   : > { %p596_p6 = pneg %p595_p7 }
  0x2f   : > { %p602_p11 = por %p601_p9, %p600_p4 }
  0x31   : > { %p603_p10 = pnand %p602_p11, %p596_p6 }
  0x33   : > { %606 = shalt.err (!%p603_p10)
}
  0x34   : > { %491 = dma.hbm_to_vmem [thread:$0]  (!%p824_p2), %s186_s29, 128, %s189_s4, %s178_s5  }
  0x35   : > { %197 = sbr.rel (%p774_p8) target bundleno = 280 (0x118), region = 32  ;;  %s835_s8 = sand.u32 (!%p774_p8), 1, %s675_s13  }
  0x36   : > { %s451_s11 = sshll.u32 (!%p774_p8), %s835_s8, 3  ;;  %s200_s18 = scalar_lea.sflag (!%p774_p8), [#allocation3], %s835_s8 }
  0x37   : > { %s203_s26 = scalar_lea.vmem (!%p774_p8), [#allocation2], %s451_s11  ;;  %p904_p12 = scmp.ne.s32.totalorder (!%p774_p8), %s897_s22, 0 }
  0x3a   : > { %658 = dma.done.wait (%p904_p12), %s200_s18, 128  }
  0x3b   : > { %660 = vsyncadd (%p904_p12), %s200_s18, 4294967168 }
  0x3c   : > { %662 = dma.done.wait (%p754_p1), [#allocation6], 512  }
  0x3d   : > { %664 = vsyncadd (%p754_p1), [#allocation6], 4294966784  ;;  %v697_v0 = vmov 0.0   ;;  %vm698_vm0 = vmmov 0   ;;  %v240_v1 = vld [vmem:[#allocation5 + $0x18] sm:$0xff]  ;;  %v239_v2 = vld [vmem:[#allocation5 + $0x10] sm:$0xff] }
  0x3e   : > { %465 = vmatprep.subr.mxu0 %v697_v0  ;;  %473 = vmatprep.mubr.msk.f32.mxu0 %vm698_vm0, %v697_v0  ;;  %v238_v3 = vld [vmem:[#allocation5 + $0x8] sm:$0xff]  ;;  %v237_v4 = vld [vmem:[#allocation5] sm:$0xff]  ;;  %v236_v5 = vld [vmem:[%s203_s26] sm:$0xff]  ;;  %vm248_vm1 = vcmask 261120   ;;  %s457_s24 = sshll.u32 %s683_s15, 7  ;;  %s232_s27 = scalar_lea.vmem [#allocation7], %s451_s11 }
  0x3f   : > { %466 = vmatpush3.msra.mxu0 %v240_v1  ;;  %v454_v6 = vld [vmem:[%s892_s2] ss:$0 sm:$0xff]  ;;  %s339_s29 = sshll.u32 %s232_s27, 4  ;;  %s337_s21 = scalar_lea.hbm %s893_s3, %s457_s24  ;;  %s340_s29 = int_to_ptr.vmem [resolvable:$true] %s339_s29 }
  0x40   : > { %467 = vmatprep.subr.mxu0 %v697_v0  ;;  %s325_s5 = scalar_lea.sflag [#allocation4], %s835_s8  ;;  %s607_s6 = scalar_lea.vmem %s340_s29, 128 }
  0x41   : > { %468 = vmatpush3.msra.mxu0 %v239_v2  ;;  %p608_p1 = scmp.ne.s32.totalorder %s340_s29, %s607_s6  ;;  %s699_s7 = smov [#allocation7]  }
  0x42   : > { %469 = vmatprep.subr.mxu0 %v697_v0  ;;  %s611_s10 = sshll.u32 %s699_s7, 4  ;;  %s612_s10 = int_to_ptr.vmem [resolvable:$false] %s611_s10 }
  0x43   : > { %470 = vmatpush3.msra.mxu0 %v238_v3  ;;  %p609_p8 = pnand %p608_p1, %p807_p13  ;;  %s613_s15 = scalar_lea.vmem %s612_s10, 256 }
  0x44   : > { %471 = vmatprep.subr.mxu0 %v697_v0  ;;  %p614_p0 = scmp.lt.s32.totalorder %s340_s29, %s612_s10  ;;  %p615_p2 = scmp.lt.s32.totalorder %s613_s15, %s607_s6 }
  0x45   : > { %472 = vmatpush3.msra.mxu0 %v237_v4  ;;  %p610_p10 = pneg %p609_p8 }
  0x46   : > { %474 = vmatmul.mubr.msk.f32.vlgmr.msra.gmra.mxu0 %vm248_vm1, %v236_v5  ;;  %p616_p3 = por %p615_p2, %p614_p0 }
  0x48   : > { %p617_p5 = pnand %p616_p3, %p610_p10 }
 0x106   : > { %v318_v7 = vpop.f32.mrf.mxu0 }
 0x107   : > { %v319_v8 = vadd.f32 %v454_v6, %v318_v7 }
 0x108   : > { %v475_v9 = vpop.f32.mrf.mxu0 }
 0x109   : > { %v322_v10 = vmax.f32 %v319_v8, 0.0 }
 0x10b   : > { %323 = vst.msk [vmem:[%s232_s27] sm:$0xff] %vm248_vm1, %v322_v10 }
 0x10c   : > { %620 = shalt.err (!%p617_p5)
}
 0x10d   : > { %s621_s25 = scalar_lea.hbm %s337_s21, 128  ;;  %s625_s18 = scalar_lea.hbm %s893_s3, 256 }
 0x10e   : > { %p622_p7 = scmp.ne.s32.totalorder %s337_s21, %s621_s25  ;;  %p626_p9 = scmp.lt.s32.totalorder %s337_s21, %s893_s3 }
 0x10f   : > { %p627_p11 = scmp.lt.s32.totalorder %s625_s18, %s621_s25 }
 0x110   : > { %p623_p6 = pnand %p622_p7, %p807_p13 }
 0x111   : > { %p628_p12 = por %p627_p11, %p626_p9 }
 0x112   : > { %p624_p4 = pneg %p623_p6 }
 0x114   : > { %p629_p1 = pnand %p628_p12, %p624_p4 }
 0x116   : > { %632 = shalt.err (!%p629_p1)
}
 0x117   : > { %482 = dma.vmem_to_hbm [thread:$0]  (%p807_p13), %s340_s29, 128, %s337_s21, %s325_s5  }
 0x118 PF: > { %s351_s22 = sand.u32 1, %s671_s12   ;;  %p905_p8 = scmp.ne.s32.totalorder %s898_s23, 0 }
 0x119   : > { %p906_p10 = scmp.ge.s32.totalorder %s691_s17, 2  ;;  %s352_s24 = scalar_lea.sflag [#allocation4], %s351_s22 }
 0x11b   : > { %p493_p0 = pnand %p906_p10, %p905_p8 }
 0x11d   : > { %p494_p2 = pneg %p493_p0 }
 0x11f   : > { %666 = dma.done.wait (%p494_p2), %s352_s24, 128  }
 0x120   : > { %668 = vsyncadd (%p494_p2), %s352_s24, 4294967168  ;;  %s20_s17 = sadd.s32 1, %s691_s17   ;;  %s907_s12 = smov %s675_s13 }
 0x121   : > { %p17_p3 = scmp.ge.s32.totalorder %s20_s17, 4   ;;  %s908_s13 = smov %s679_s14 }
 0x122   : > { %s909_s14 = smov %s816_s19  ;;  %s910_s15 = smov %s687_s16 }
 0x123   : > { %s911_s16 = smov %s913_s28  ;;  %19 = sbr.rel (!%p17_p3) target bundleno = 7 (0x7), region = 85 }
 0x128   :  { %357 = vsyncpa [#allocation3], 1 }
 0x129   :  { %359 = vsyncpa [#allocation3 + $0x1], 1 }
 0x12a   :  { %360 = vsyncpa [#allocation6], 1 }
 0x12b   :  { %361 = vsyncpa [#allocation4], 1 }
 0x12c   :  { %363 = vsyncpa [#allocation4 + $0x1], 1 }

// kernel: tpu_custom_call.1
= control target key start
LH: loop header
LB: loop body
LE: loop exit
PB: predicated region body
PF: predicated region fallthrough
CT: control target
= control target key end

     0   :  { %8 = vsyncpa [#allocation3], 0  ;;  %s890_s0 = inlined_call_operand.hbm [shape: f32[16,32], index: 0, kind: input, shape index: {}]   ;;  %s891_s1 = inlined_call_operand.hbm [shape: f32[32,32], index: 1, kind: input, shape index: {}]   ;;  %s892_s2 = inlined_call_operand.vmem [shape: f32[1,32], index: 2, kind: input, shape index: {}]   ;;  %s893_s3 = inlined_call_operand.hbm [shape: f32[16,32], index: 3, kind: output, shape index: {}]  }
   0x1   :  { %10 = vsyncpa [#allocation3 + $0x1], 0 }
   0x2   :  { %11 = vsyncpa [#allocation6], 0 }
   0x3   :  { %12 = vsyncpa [#allocation4], 0 }
   0x4   :  { %14 = vsyncpa [#allocation4 + $0x1], 0  ;;  %s720_s12 = smov 0   ;;  %s722_s13 = smov 0  }
   0x5   :  { %s724_s14 = smov 0   ;;  %s726_s15 = smov 0  }
   0x6   :  { %s728_s16 = smov 0   ;;  %s730_s17 = smov 0  }
   0x7 LB: > { %s442_s18 = sadd.s32 4294967295, %s691_s17   ;;  %s443_s19 = sadd.s32 4294967294, %s691_s17   ;;  %s691_s17 = sphi %s730_s17, %s20_s17   ;;  %s687_s16 = sphi %s728_s16, %s911_s16   ;;  %s683_s15 = sphi %s726_s15, %s910_s15   ;;  %s679_s14 = sphi %s724_s14, %s909_s14   ;;  %s675_s13 = sphi %s722_s13, %s908_s13   ;;  %s671_s12 = sphi %s720_s12, %s907_s12  }
   0x8   : > { %p52_p0 = scmp.ne.s32.totalorder %s675_s13, %s671_s12  ;;  %p754_p1 = scmp.eq.s32.totalorder %s442_s18, 0 }
   0x9   : > { %p758_p2 = scmp.eq.s32.totalorder %s442_s18, 1  ;;  %p136_p3 = scmp.eq.s32.totalorder %s443_s19, 1 }
   0xa   : > { %p764_p4 = por %p754_p1, %p52_p0  ;;  %p444_p5 = scmp.ge.s32.totalorder %s691_s17, 1 }
   0xb   : > { %p769_p6 = por %p136_p3, %p52_p0  ;;  %p143_p7 = scmp.lt.s32.totalorder %s691_s17, 3 }
   0xc   : > { %s897_s22 = scalar_select %p764_p4, 1, 0 }
   0xd   : > { %s898_s23 = scalar_select %p769_p6, 1, 0 }
   0xe   : > { %p774_p8 = pnand %p444_p5, %p143_p7  ;;  %s693_s25 = smov [#allocation5]  }
   0xf   : > { %s157_s26 = sshll.u32 %s693_s25, 4  ;;  %s29_s28 = sadd.s32 1, %s687_s16  ;;  %s158_s26 = int_to_ptr.vmem [resolvable:$true] %s157_s26 }
  0x10   : > { %p484_p9 = pneg %p774_p8  ;;  %s564_s29 = scalar_lea.vmem %s158_s26, 512 }
  0x11   : > { %p565_p13 = scmp.ne.s32.totalorder %s158_s26, %s564_s29  ;;  %p572_p5 = scmp.lt.s32.totalorder %s158_s26, %s158_s26 }
  0x12   : > { %p783_p11 = pnand %p484_p9, %p754_p1  ;;  %p573_p7 = scmp.lt.s32.totalorder %s564_s29, %s564_s29 }
  0x14   : > { %p555_p12 = pneg %p783_p11  ;;  %p574_p6 = por %p573_p7, %p572_p5 }
  0x16   : > { %p567_p0 = pnand %p565_p13, %p555_p12 }
  0x18   : > { %p568_p3 = pneg %p567_p0 }
  0x1a   : > { %p575_p4 = pnand %p574_p6, %p568_p3 }
  0x1c   : > { %578 = shalt.err (!%p575_p4)
}
  0x1d   : > { %s694_s30 = smov 128   ;;  %s695_s4 = smov 8  }
  0x1e   : > { %487 = dma.hbm_to_vmem [thread:$0]  (!%p783_p11), %s891_s1, 512, %s158_s26, [#allocation6], %s694_s30, %s694_s30, %s695_s4  }
  0x1f   : > { %p30_p6 = scmp.ge.s32.totalorder %s29_s28, 2  ;;  %s39_s7 = sadd.s32 1, %s679_s14 }
  0x20   : > { %p46_p4 = scmp.ne.s32.totalorder %s679_s14, %s675_s13  ;;  %p47_p9 = scmp.eq.s32.totalorder %s691_s17, 0 }
  0x21   : > { %s913_s28 = smov (%p30_p6, %s29_s28), 0  ;;  %p497_p0 = scmp.lt.s32.totalorder %s691_s17, 2 }
  0x22   : > { %p801_p12 = por %p47_p9, %p46_p4  ;;  %p807_p13 = por %p758_p2, %p46_p4 }
  0x23   : > { %s36_s10 = ssub.s32 %s687_s16, %s913_s28  ;;  %s177_s11 = sand.u32 1, %s679_s14  }
  0x24   : > { %p37_p11 = scmp.eq.s32.totalorder %s36_s10, 0  ;;  %s448_s18 = sshll.u32 %s177_s11, 3 }
  0x25   : > { %s449_s25 = sshll.u32 %s687_s16, 7  ;;  %s181_s30 = scalar_lea.vmem [#allocation2], %s448_s18 }
  0x26   : > { %s816_s19 = scalar_select %p37_p11, %s679_s14, %s39_s7  }
  0x27   : > { %s186_s29 = scalar_lea.hbm %s890_s0, %s449_s25  ;;  %s188_s4 = sshll.u32 %s181_s30, 4  ;;  %s189_s4 = int_to_ptr.vmem [resolvable:$true] %s188_s4 }
  0x28   : > { %p824_p2 = pnand %p497_p0, %p801_p12  ;;  %s178_s5 = scalar_lea.sflag [#allocation3], %s177_s11 }
  0x29   : > { %s592_s6 = scalar_lea.vmem %s189_s4, 128  ;;  %s696_s7 = smov [#allocation2]  }
  0x2a   : > { %p581_p3 = pneg %p824_p2  ;;  %p593_p5 = scmp.ne.s32.totalorder %s189_s4, %s592_s6 }
  0x2b   : > { %s597_s10 = sshll.u32 %s696_s7, 4  ;;  %s598_s10 = int_to_ptr.vmem [resolvable:$false] %s597_s10 }
  0x2c   : > { %p595_p7 = pnand %p593_p5, %p581_p3  ;;  %s599_s25 = scalar_lea.vmem %s598_s10, 256 }
  0x2d   : > { %p600_p4 = scmp.lt.s32.totalorder %s189_s4, %s598_s10  ;;  %p601_p9 = scmp.lt.s32.totalorder %s599_s25, %s592_s6 }
  0x2e   : > { %p596_p6 = pneg %p595_p7 }
  0x2f   : > { %p602_p11 = por %p601_p9, %p600_p4 }
  0x31   : > { %p603_p10 = pnand %p602_p11, %p596_p6 }
  0x33   : > { %606 = shalt.err (!%p603_p10)
}
  0x34   : > { %491 = dma.hbm_to_vmem [thread:$0]  (!%p824_p2), %s186_s29, 128, %s189_s4, %s178_s5  }
  0x35   : > { %197 = sbr.rel (%p774_p8) target bundleno = 280 (0x118), region = 32  ;;  %s835_s8 = sand.u32 (!%p774_p8), 1, %s675_s13  }
  0x36   : > { %s451_s11 = sshll.u32 (!%p774_p8), %s835_s8, 3  ;;  %s200_s18 = scalar_lea.sflag (!%p774_p8), [#allocation3], %s835_s8 }
  0x37   : > { %s203_s26 = scalar_lea.vmem (!%p774_p8), [#allocation2], %s451_s11  ;;  %p904_p12 = scmp.ne.s32.totalorder (!%p774_p8), %s897_s22, 0 }
  0x3a   : > { %658 = dma.done.wait (%p904_p12), %s200_s18, 128  }
  0x3b   : > { %660 = vsyncadd (%p904_p12), %s200_s18, 4294967168 }
  0x3c   : > { %662 = dma.done.wait (%p754_p1), [#allocation6], 512  }
  0x3d   : > { %664 = vsyncadd (%p754_p1), [#allocation6], 4294966784  ;;  %v697_v0 = vmov 0.0   ;;  %vm698_vm0 = vmmov 0   ;;  %v240_v1 = vld [vmem:[#allocation5 + $0x18] sm:$0xff]  ;;  %v239_v2 = vld [vmem:[#allocation5 + $0x10] sm:$0xff] }
  0x3e   : > { %465 = vmatprep.subr.mxu0 %v697_v0  ;;  %473 = vmatprep.mubr.msk.f32.mxu0 %vm698_vm0, %v697_v0  ;;  %v238_v3 = vld [vmem:[#allocation5 + $0x8] sm:$0xff]  ;;  %v237_v4 = vld [vmem:[#allocation5] sm:$0xff]  ;;  %v236_v5 = vld [vmem:[%s203_s26] sm:$0xff]  ;;  %vm248_vm1 = vcmask 261120   ;;  %s457_s24 = sshll.u32 %s683_s15, 7  ;;  %s232_s27 = scalar_lea.vmem [#allocation7], %s451_s11 }
  0x3f   : > { %466 = vmatpush3.msra.mxu0 %v240_v1  ;;  %v454_v6 = vld [vmem:[%s892_s2] ss:$0 sm:$0xff]  ;;  %s339_s29 = sshll.u32 %s232_s27, 4  ;;  %s337_s21 = scalar_lea.hbm %s893_s3, %s457_s24  ;;  %s340_s29 = int_to_ptr.vmem [resolvable:$true] %s339_s29 }
  0x40   : > { %467 = vmatprep.subr.mxu0 %v697_v0  ;;  %s325_s5 = scalar_lea.sflag [#allocation4], %s835_s8  ;;  %s607_s6 = scalar_lea.vmem %s340_s29, 128 }
  0x41   : > { %468 = vmatpush3.msra.mxu0 %v239_v2  ;;  %p608_p1 = scmp.ne.s32.totalorder %s340_s29, %s607_s6  ;;  %s699_s7 = smov [#allocation7]  }
  0x42   : > { %469 = vmatprep.subr.mxu0 %v697_v0  ;;  %s611_s10 = sshll.u32 %s699_s7, 4  ;;  %s612_s10 = int_to_ptr.vmem [resolvable:$false] %s611_s10 }
  0x43   : > { %470 = vmatpush3.msra.mxu0 %v238_v3  ;;  %p609_p8 = pnand %p608_p1, %p807_p13  ;;  %s613_s15 = scalar_lea.vmem %s612_s10, 256 }
  0x44   : > { %471 = vmatprep.subr.mxu0 %v697_v0  ;;  %p614_p0 = scmp.lt.s32.totalorder %s340_s29, %s612_s10  ;;  %p615_p2 = scmp.lt.s32.totalorder %s613_s15, %s607_s6 }
  0x45   : > { %472 = vmatpush3.msra.mxu0 %v237_v4  ;;  %p610_p10 = pneg %p609_p8 }
  0x46   : > { %474 = vmatmul.mubr.msk.f32.vlgmr.msra.gmra.mxu0 %vm248_vm1, %v236_v5  ;;  %p616_p3 = por %p615_p2, %p614_p0 }
  0x48   : > { %p617_p5 = pnand %p616_p3, %p610_p10 }
 0x106   : > { %v318_v7 = vpop.f32.mrf.mxu0 }
 0x107   : > { %v319_v8 = vadd.f32 %v454_v6, %v318_v7 }
 0x108   : > { %v475_v9 = vpop.f32.mrf.mxu0 }
 0x109   : > { %v322_v10 = vmax.f32 %v319_v8, 0.0 }
 0x10b   : > { %323 = vst.msk [vmem:[%s232_s27] sm:$0xff] %vm248_vm1, %v322_v10 }
 0x10c   : > { %620 = shalt.err (!%p617_p5)
}
 0x10d   : > { %s621_s25 = scalar_lea.hbm %s337_s21, 128  ;;  %s625_s18 = scalar_lea.hbm %s893_s3, 256 }
 0x10e   : > { %p622_p7 = scmp.ne.s32.totalorder %s337_s21, %s621_s25  ;;  %p626_p9 = scmp.lt.s32.totalorder %s337_s21, %s893_s3 }
 0x10f   : > { %p627_p11 = scmp.lt.s32.totalorder %s625_s18, %s621_s25 }
 0x110   : > { %p623_p6 = pnand %p622_p7, %p807_p13 }
 0x111   : > { %p628_p12 = por %p627_p11, %p626_p9 }
 0x112   : > { %p624_p4 = pneg %p623_p6 }
 0x114   : > { %p629_p1 = pnand %p628_p12, %p624_p4 }
 0x116   : > { %632 = shalt.err (!%p629_p1)
}
 0x117   : > { %482 = dma.vmem_to_hbm [thread:$0]  (%p807_p13), %s340_s29, 128, %s337_s21, %s325_s5  }
 0x118 PF: > { %s351_s22 = sand.u32 1, %s671_s12   ;;  %p905_p8 = scmp.ne.s32.totalorder %s898_s23, 0 }
 0x119   : > { %p906_p10 = scmp.ge.s32.totalorder %s691_s17, 2  ;;  %s352_s24 = scalar_lea.sflag [#allocation4], %s351_s22 }
 0x11b   : > { %p493_p0 = pnand %p906_p10, %p905_p8 }
 0x11d   : > { %p494_p2 = pneg %p493_p0 }
 0x11f   : > { %666 = dma.done.wait (%p494_p2), %s352_s24, 128  }
 0x120   : > { %668 = vsyncadd (%p494_p2), %s352_s24, 4294967168  ;;  %s20_s17 = sadd.s32 1, %s691_s17   ;;  %s907_s12 = smov %s675_s13 }
 0x121   : > { %p17_p3 = scmp.ge.s32.totalorder %s20_s17, 4   ;;  %s908_s13 = smov %s679_s14 }
 0x122   : > { %s909_s14 = smov %s816_s19  ;;  %s910_s15 = smov %s687_s16 }
 0x123   : > { %s911_s16 = smov %s913_s28  ;;  %19 = sbr.rel (!%p17_p3) target bundleno = 7 (0x7), region = 85 }
 0x128   :  { %357 = vsyncpa [#allocation3], 1 }
 0x129   :  { %359 = vsyncpa [#allocation3 + $0x1], 1 }
 0x12a   :  { %360 = vsyncpa [#allocation6], 1 }
 0x12b   :  { %361 = vsyncpa [#allocation4], 1 }
 0x12c   :  { %363 = vsyncpa [#allocation4 + $0x1], 1 }

</bundles_post_ra>
